<compile_context>
chip_gen: v5e
topology: v5e:2x2
jax: 0.10.0
libtpu: 0.0.40
codegen_flags: <defaults>
</compile_context>

<pallas_src>
import jax
import jax.numpy as jnp
from jax.experimental import pallas as pl
from jax.experimental.pallas import tpu as pltpu

LANE = 128       # class axis padded to lane width -> unmasked, lane-dense vst
SUB = 8          # f32 sublane alignment for batch tiles
K_ALIGN = 512    # K-tile granularity when nhid must be split
MAX_TM = 2048    # soft cap on the batch tile


def _round_up(n, m):
    return ((n + m - 1) // m) * m


def _cdiv(a, b):
    return (a + b - 1) // b


def _vmem_budget_bytes():
    """~80% of physical VMEM (generation-aware); conservative fallback 64 MiB."""
    cap = 64 << 20
    try:
        info = pltpu.get_tpu_info()
        cap = int(getattr(info, "vmem_capacity_bytes", cap))
    except Exception:
        pass
    return int(cap * 0.8)


# ----------------------------- kernels --------------------------------------

def _mlp_kernel_resident(x_ref, w_ref, b_ref, o_ref):
    """Single K step: whole (padded) W held VMEM-resident."""
    # bf16 MXU matmul, f32 accumulation. x is cast here so the wrapper never
    # rewrites x in HBM. Padded class columns: W = 0, bias = -1e30, so they
    # vanish from the softmax without any in-kernel masking.
    logits = jnp.dot(x_ref[...].astype(jnp.bfloat16), w_ref[...],
                     preferred_element_type=jnp.float32)
    logits = logits + b_ref[...]                      # (TM, NP) + (1, NP)
    m = jnp.max(logits, axis=-1, keepdims=True)       # XLU reduce
    shifted = logits - m
    lse = jnp.log(jnp.sum(jnp.exp(shifted), axis=-1, keepdims=True))  # EUP
    o_ref[...] = (shifted - lse).astype(o_ref.dtype)  # lane-dense store


def _mlp_kernel_ktiled(x_ref, w_ref, b_ref, o_ref, acc_ref):
    """K (nhid) tiled: f32 VMEM accumulator, epilogue on the last K step."""
    k = pl.program_id(1)

    @pl.when(k == 0)
    def _():
        acc_ref[...] = jnp.zeros_like(acc_ref)

    acc_ref[...] += jnp.dot(x_ref[...].astype(jnp.bfloat16), w_ref[...],
                            preferred_element_type=jnp.float32)

    @pl.when(k == pl.num_programs(1) - 1)
    def _():
        logits = acc_ref[...] + b_ref[...]
        m = jnp.max(logits, axis=-1, keepdims=True)
        shifted = logits - m
        lse = jnp.log(jnp.sum(jnp.exp(shifted), axis=-1, keepdims=True))
        o_ref[...] = (shifted - lse).astype(o_ref.dtype)


# ------------------------ one-time setup + forward ---------------------------

def make_mlp(w, b):
    """One-time setup. w: (nhid, nclass) f32, b: (nclass,) f32.

    Returns forward(x) -> log_softmax(x @ w + b, axis=1) as f32 (B, nclass).
    """
    nhid, nclass = w.shape
    np_pad = _round_up(nclass, LANE)
    budget = _vmem_budget_bytes()

    # ---- K (hidden) axis plan: keep W resident if its double-buffered bf16
    # slab fits in half the budget, otherwise tile K (decided once at init).
    w_db_bytes = 2 * nhid * np_pad * 2
    if w_db_bytes <= budget // 2:
        tk, kt, k_pad = nhid, 1, nhid
    else:
        tk = max(K_ALIGN,
                 ((budget // 2) // (2 * np_pad * 2)) // K_ALIGN * K_ALIGN)
        tk = min(tk, _round_up(nhid, K_ALIGN))
        k_pad = _round_up(nhid, tk)
        kt = k_pad // tk

    # One-time pad + cast of the params (never repeated per call). Padded
    # class columns: W = 0 and bias = -1e30 (replaces the in-kernel mask).
    w_p = jnp.zeros((k_pad, np_pad), jnp.bfloat16).at[:nhid, :nclass].set(
        w.astype(jnp.bfloat16))
    b_p = jnp.full((1, np_pad), -1e30, jnp.float32).at[0, :nclass].set(
        b.astype(jnp.float32))

    def forward(x):
        B, nh = x.shape
        assert nh == nhid, f"expected hidden size {nhid}, got {nh}"

        # ---- batch tile from the remaining VMEM budget ----
        acc_row = np_pad * 4 if kt > 1 else 0          # acc scratch (single buf)
        per_row = 2 * tk * 4 + 2 * np_pad * 4 + acc_row  # x(2 bufs,f32) + out(2,f32)
        fixed = 2 * tk * np_pad * 2 + 2 * np_pad * 4     # W(2 bufs,bf16) + bias(2)
        tm = max((budget - fixed) // per_row, SUB)
        tm = min(tm, _round_up(B, SUB), MAX_TM)
        # v7x megacore: keep >= 2 batch steps whenever the batch allows it.
        if B >= 2 * SUB:
            tm = min(tm, _round_up(_cdiv(B, 2), SUB))
        tm = max((tm // SUB) * SUB, SUB)

        b_rows = _round_up(B, tm)
        bt = b_rows // tm

        # Pad x only when the batch / hidden axes need it (no dtype rewrite).
        if b_rows != B or k_pad != nhid:
            x_in = jnp.zeros((b_rows, k_pad), x.dtype).at[:B, :nhid].set(x)
        else:
            x_in = x

        step_bytes = (2 * tm * tk * 4            # x tile (f32, double-buffered)
                      + 2 * tk * np_pad * 2      # W tile (bf16, double-buffered)
                      + 2 * np_pad * 4           # bias
                      + 2 * tm * np_pad * 4      # out tile (f32, double-buffered)
                      + (tm * np_pad * 4 if kt > 1 else 0))  # acc scratch
        vmem_limit = int(min(budget, max(2 * step_bytes, 16 << 20)))

        out_shape = jax.ShapeDtypeStruct((b_rows, np_pad), jnp.float32)

        if kt == 1:
            out = pl.pallas_call(
                _mlp_kernel_resident,
                out_shape=out_shape,
                grid_spec=pltpu.PrefetchScalarGridSpec(
                    num_scalar_prefetch=0,
                    grid=(bt,),
                    in_specs=[
                        pl.BlockSpec((tm, k_pad), lambda i: (i, 0)),     # x
                        pl.BlockSpec((k_pad, np_pad), lambda i: (0, 0)),  # W
                        pl.BlockSpec((1, np_pad), lambda i: (0, 0)),      # bias
                    ],
                    out_specs=pl.BlockSpec((tm, np_pad), lambda i: (i, 0)),
                ),
                compiler_params=pltpu.CompilerParams(
                    dimension_semantics=("parallel",),
                    vmem_limit_bytes=vmem_limit,
                ),
            )(x_in, w_p, b_p)
        else:
            out = pl.pallas_call(
                _mlp_kernel_ktiled,
                out_shape=out_shape,
                grid_spec=pltpu.PrefetchScalarGridSpec(
                    num_scalar_prefetch=0,
                    grid=(bt, kt),
                    in_specs=[
                        pl.BlockSpec((tm, tk), lambda i, k: (i, k)),       # x
                        pl.BlockSpec((tk, np_pad), lambda i, k: (k, 0)),   # W
                        pl.BlockSpec((1, np_pad), lambda i, k: (0, 0)),    # bias
                    ],
                    out_specs=pl.BlockSpec((tm, np_pad), lambda i, k: (i, 0)),
                    scratch_shapes=[pltpu.VMEM((tm, np_pad), jnp.float32)],
                ),
                compiler_params=pltpu.CompilerParams(
                    dimension_semantics=("parallel", "arbitrary"),
                    vmem_limit_bytes=vmem_limit,
                ),
            )(x_in, w_p, b_p)

        # Skip the extra copy when nothing was padded.
        if b_rows != B or np_pad != nclass:
            out = out[:B, :nclass]
        return out

    return forward


if __name__ == "__main__":
    # Shapes consistent with the module's forward: fc1 maps nhid -> nclass.
    batch, nhid, nclass = 8, 32, 16
    dropout = 0.5  # TODO(synk): dropout is stored by the module but never used in forward().

    key = jax.random.PRNGKey(0)
    kx, kw, kb = jax.random.split(key, 3)

    x = jax.random.normal(kx, (batch, nhid), dtype=jnp.float32)
    bound = 1.0 / float(nhid) ** 0.5
    w = jax.random.uniform(kw, (nhid, nclass), dtype=jnp.float32,
                           minval=-bound, maxval=bound)
    b = jax.random.uniform(kb, (nclass,), dtype=jnp.float32,
                           minval=-bound, maxval=bound)

    forward = make_mlp(w, b)
    out = forward(x)
    jax.block_until_ready(out)

    # Reference with matching bf16 matmul operands (f32 accumulation).
    xr = x.astype(jnp.bfloat16).astype(jnp.float32)
    wr = w.astype(jnp.bfloat16).astype(jnp.float32)
    ref = jax.nn.log_softmax(xr @ wr + b, axis=1)
    assert out.shape == (batch, nclass)
    assert jnp.allclose(out, ref, atol=1e-3, rtol=1e-3), float(
        jnp.max(jnp.abs(out - ref)))

    print("KERNEL_OK")
</pallas_src>

<mosaic_0001>
module attributes {stable_mosaic.version = 11 : i64} {
  func.func @_mlp_kernel_resident(%arg0: i32, %arg1: memref<8x32xf32, #tpu.memory_space<vmem>>, %arg2: memref<32x128xbf16, #tpu.memory_space<vmem>>, %arg3: memref<1x128xf32, #tpu.memory_space<vmem>>, %arg4: memref<8x128xf32, #tpu.memory_space<vmem>>) attributes {dimension_semantics = [#tpu.dimension_semantics<parallel>], iteration_bounds = array<i64: 1>, scalar_prefetch = 0 : i64, scratch_operands = 0 : i64, tpu.core_type = #tpu.core_type<tc>, window_params = [{transform_indices = @transform_0, window_bounds = array<i64: 8, 32>}, {pipeline_mode = #tpu.pipeline_mode<synchronous>, transform_indices = @transform_1, window_bounds = array<i64: 32, 128>}, {pipeline_mode = #tpu.pipeline_mode<synchronous>, transform_indices = @transform_2, window_bounds = array<i64: 1, 128>}, {transform_indices = @transform_3, window_bounds = array<i64: 8, 128>}]} {
    %c0 = arith.constant 0 : index
    %c0_0 = arith.constant 0 : index
    %0 = vector.load %arg1[%c0, %c0_0] : memref<8x32xf32, #tpu.memory_space<vmem>>, vector<8x32xf32>
    %1 = arith.truncf %0 : vector<8x32xf32> to vector<8x32xbf16>
    %c0_1 = arith.constant 0 : index
    %c0_2 = arith.constant 0 : index
    %2 = vector.load %arg2[%c0_1, %c0_2] : memref<32x128xbf16, #tpu.memory_space<vmem>>, vector<32x128xbf16>
    %cst = arith.constant dense<0.000000e+00> : vector<8x128xf32>
    %3 = tpu.matmul %1, %2, %cst {dimension_numbers = #tpu.dot_dimension_numbers<[1], [0], [0], [1], [0, 0, 1, 1], [], []>} : vector<8x32xbf16>, vector<32x128xbf16>, vector<8x128xf32> -> vector<8x128xf32>
    %c0_3 = arith.constant 0 : index
    %c0_4 = arith.constant 0 : index
    %4 = vector.load %arg3[%c0_3, %c0_4] : memref<1x128xf32, #tpu.memory_space<vmem>>, vector<1x128xf32>
    %5 = vector.broadcast %4 : vector<1x128xf32> to vector<8x128xf32>
    %6 = arith.addf %3, %5 : vector<8x128xf32>
    %cst_5 = arith.constant dense<0xFF800000> : vector<8xf32>
    %7 = vector.multi_reduction <maximumf>, %6, %cst_5 [1] : vector<8x128xf32> to vector<8xf32>
    %8 = vector.shape_cast %7 : vector<8xf32> to vector<8x1xf32>
    %9 = vector.broadcast %8 : vector<8x1xf32> to vector<8x128xf32>
    %10 = arith.subf %6, %9 : vector<8x128xf32>
    %11 = math.exp %10 : vector<8x128xf32>
    %cst_6 = arith.constant dense<0.000000e+00> : vector<8xf32>
    %12 = vector.multi_reduction <add>, %11, %cst_6 [1] : vector<8x128xf32> to vector<8xf32>
    %13 = vector.shape_cast %12 : vector<8xf32> to vector<8x1xf32>
    %14 = math.log %13 : vector<8x1xf32>
    %15 = vector.broadcast %14 : vector<8x1xf32> to vector<8x128xf32>
    %16 = arith.subf %10, %15 : vector<8x128xf32>
    %c0_7 = arith.constant 0 : index
    %c0_8 = arith.constant 0 : index
    %17 = vector.load %arg4[%c0_7, %c0_8] : memref<8x128xf32, #tpu.memory_space<vmem>>, vector<8x128xf32>
    tpu.vector_store %arg4[%c0_7, %c0_8], %16 {strides = array<i32>} : memref<8x128xf32, #tpu.memory_space<vmem>>, vector<8x128xf32>,
    return
  }
  func.func @transform_0(%arg0: i32) -> (i32, i32) {
    %c0_i32 = arith.constant 0 : i32
    %c0_i32_0 = arith.constant 0 : i32
    return %arg0, %c0_i32 : i32, i32
  }
  func.func @transform_1(%arg0: i32) -> (i32, i32) {
    %c0_i32 = arith.constant 0 : i32
    %c0_i32_0 = arith.constant 0 : i32
    %c0_i32_1 = arith.constant 0 : i32
    return %c0_i32, %c0_i32_0 : i32, i32
  }
  func.func @transform_2(%arg0: i32) -> (i32, i32) {
    %c0_i32 = arith.constant 0 : i32
    %c0_i32_0 = arith.constant 0 : i32
    %c0_i32_1 = arith.constant 0 : i32
    return %c0_i32, %c0_i32_0 : i32, i32
  }
  func.func @transform_3(%arg0: i32) -> (i32, i32) {
    %c0_i32 = arith.constant 0 : i32
    %c0_i32_0 = arith.constant 0 : i32
    return %arg0, %c0_i32 : i32, i32
  }
}

</mosaic_0001>

<bundles_post_ra>
// kernel: tpu_custom_call.1
= control target key start
LH: loop header
LB: loop body
LE: loop exit
PB: predicated region body
PF: predicated region fallthrough
CT: control target
= control target key end

     0   :  { %8 = vsyncpa [#allocation3], 0  ;;  %s250_s0 = inlined_call_operand.hbm [shape: f32[8,32], index: 0, kind: input, shape index: {}]   ;;  %s251_s1 = inlined_call_operand.hbm [shape: bf16[32,128], index: 1, kind: input, shape index: {}]   ;;  %s252_s2 = inlined_call_operand.vmem [shape: f32[1,128], index: 2, kind: input, shape index: {}]   ;;  %s253_s3 = inlined_call_operand.hbm [shape: f32[8,128], index: 3, kind: output, shape index: {}]  }
   0x1   :  { %9 = vsyncpa [#allocation6], 0 }
   0x2   :  { %10 = vsyncpa [#allocation4], 0  ;;  %s16_s14 = sshll.u32 %s250_s0, 4  ;;  %s213_s15 = smov [#allocation2]   ;;  %s17_s14 = int_to_ptr.hbm [resolvable:$true] %s16_s14 }
   0x3   :  { %s18_s16 = sshll.u32 %s213_s15, 4  ;;  %s26_s19 = sshll.u32 %s251_s1, 4  ;;  %s19_s16 = int_to_ptr.vmem [resolvable:$true] %s18_s16  ;;  %s27_s19 = int_to_ptr.hbm [resolvable:$true] %s26_s19 }
   0x4   :  { %21 = dma.hbm_to_vmem [thread:$0]  %s17_s14, 128, %s19_s16, [#allocation3]  }
   0x5   :  { %s214_s20 = smov [#allocation5]   ;;  %s215_s22 = smov 64  }
   0x6   :  { %s28_s21 = sshll.u32 %s214_s20, 4  ;;  %s216_s23 = smov 4   ;;  %s29_s21 = int_to_ptr.vmem [resolvable:$true] %s28_s21 }
   0x7   :  { %34 = dma.hbm_to_vmem [thread:$0]  %s27_s19, 256, %s29_s21, [#allocation6], %s215_s22, %s215_s22, %s216_s23  }
   0x8   :  { %207 = dma.done.wait [#allocation3], 128  }
   0x9   :  { %208 = vsyncadd [#allocation3], 4294967168 }
   0xa   :  { %209 = dma.done.wait [#allocation6], 256  }
   0xb   :  { %210 = vsyncadd [#allocation6], 4294967040  ;;  %v124_v0 = vld [vmem:[#allocation5 + $0x8] sm:$0xff]  ;;  %v123_v1 = vld [vmem:[#allocation5] sm:$0xff]  ;;  %vm68_vm0 = vcmask 261120   ;;  %s217_s24 = smov [#allocation7]  }
   0xc   :  { %78 = vmatpush.bf16.msra.mxu0 %v124_v0  ;;  %v46_v2 = vld [vmem:[#allocation2] sm:$0xff]  ;;  %s101_s25 = sshll.u32 %s217_s24, 4  ;;  %s103_s28 = sshll.u32 %s253_s3, 4  ;;  %s102_s25 = int_to_ptr.vmem [resolvable:$true] %s101_s25  ;;  %s104_s28 = int_to_ptr.hbm [resolvable:$true] %s103_s28 }
   0xd   :  { %v47_v3 = vpack.c.bf16 %v46_v2, %v46_v2  ;;  %v130_v4 = vld [vmem:[%s252_s2] ss:$0 sm:$0xff] }
  0x10   :  { %79 = vmatpush.bf16.msra.mxu0 %v123_v1 }
  0x13   :  { %122 = vmatmul.msk.bf16.vlgmr.msra.gmra.mxu0 %vm68_vm0, %v47_v3 }
  0x90   :  { %v81_v5 = vpop.f32.mrf.mxu0 }
  0x91   :  { %v82_v6 = vadd.f32 %v130_v4, %v81_v5 }
  0x93   :  { %85 = vmax.xlane.f32.xlu0 %v82_v6 }
  0x98   :  { %v83_v7 = vpop.f32.mrf.mxu0 }
 0x106   :  { %v86_v8 = vpop.xlane.xlu0 %85 }
 0x107   :  { %v87_v9 = vsub.f32 %v82_v6, %v86_v8 }
 0x109   :  { %v88_v10 = vmul.f32 1.442695, %v87_v9 }
 0x10b   :  { %131 = vpow2.f32 %v88_v10 }
 0x111   :  { %v132_v11 = vpop.eup %131 }
 0x112   :  { %90 = vadd.xlane.f32.xlu0 %v132_v11 }
 0x185   :  { %v91_v12 = vpop.xlane.xlu0 %90 }
 0x186   :  { %133 = vlog2.f32 %v91_v12 }
 0x18c   :  { %v134_v13 = vpop.eup %133 }
 0x18d   :  { %v93_v14 = vmul.f32 0.6931472, %v134_v13 }
 0x18f   :  { %v94_v15 = vsub.f32 %v87_v9, %v93_v14 }
 0x191   :  { %95 = vst [vmem:[#allocation7] sm:$0xff] %v94_v15 }
 0x192   :  { %106 = dma.vmem_to_hbm [thread:$0]  %s102_s25, 128, %s104_s28, [#allocation4]  }
 0x193   :  { %211 = dma.done.wait [#allocation4], 128  }
 0x194   :  { %212 = vsyncadd [#allocation4], 4294967168 }
 0x195   :  { %111 = vsyncpa [#allocation3], 1 }
 0x196   :  { %112 = vsyncpa [#allocation6], 1 }
 0x197   :  { %113 = vsyncpa [#allocation4], 1 }

</bundles_post_ra>
